<compile_context>
chip_gen: v7x
topology: tpu7x:2x2x1
jax: 0.10.0
libtpu: 0.0.40
codegen_flags: <defaults>
</compile_context>

<pallas_src>
import math

import jax
import jax.numpy as jnp
from jax.experimental import pallas as pl
from jax.experimental.pallas import tpu as pltpu


def _round_up(x: int, m: int) -> int:
    return ((x + m - 1) // m) * m


def _make_mlp_kernel(num_layers: int):
    """Kernel for one (ensemble-member, batch-tile, K-tile) grid step."""

    def kernel(x_ref, *refs):
        # refs = [w0, b0, w1, b1, ..., w_{L-1}, b_{L-1}, out, acc]
        acc_ref = refs[-1]
        out_ref = refs[-2]
        p = refs[:-2]

        k = pl.program_id(2)
        nk = pl.num_programs(2)

        @pl.when(k == 0)
        def _init():
            # Fold the layer-0 bias into the accumulator init (saves an extra
            # full-tile add at finalize).
            acc_ref[...] = jnp.broadcast_to(p[1][...], acc_ref.shape)

        # Layer-0 partial matmul over this K tile: bf16 inputs, f32 accumulate.
        acc_ref[...] += jnp.dot(
            x_ref[...], p[0][...], preferred_element_type=jnp.float32
        )

        @pl.when(k == nk - 1)
        def _finalize():
            h = acc_ref[...]
            if num_layers > 1:
                h = jnp.maximum(h, 0.0)           # ReLU after layer 0
            for li in range(1, num_layers):
                w = p[2 * li][...]                # (din_p, dout_p) bf16
                b = p[2 * li + 1][...]            # (1, dout_p)     f32
                h = jnp.dot(h.astype(w.dtype), w,
                            preferred_element_type=jnp.float32) + b
                if li < num_layers - 1:
                    h = jnp.maximum(h, 0.0)
            out_ref[...] = h.astype(out_ref.dtype)

    return kernel


def ensemble_mlp_forward(x, weights, biases, *, tb_target=256,
                         vmem_budget_bytes=40 << 20):
    """Pallas implementation of EnsembleSSL(arch='mlp').forward.

    Args:
      x:        (B, D_in) float32
      weights:  list; weights[l] has shape (E, D_l_in, D_l_out)  (already W.T)
      biases:   list; biases[l]  has shape (E, D_l_out)

    Returns:
      (E, B, num_classes) float32  — torch.stack of per-member outputs.
    """
    num_layers = len(weights)
    E = weights[0].shape[0]
    B, D_in = x.shape
    num_classes = weights[-1].shape[-1]

    def nbytes(shape, dt):
        return math.prod(shape) * jnp.dtype(dt).itemsize

    # ---------------- padded, lane/sublane-aligned tile geometry ------------
    tb = min(_round_up(B, 8), tb_target)          # batch tile (sublane mult of 8)
    B_p = _round_up(B, tb)
    D_in_p = _round_up(D_in, 128)

    dims = [D_in] + [w.shape[-1] for w in weights]
    dims_p = [D_in_p] + [_round_up(d, 128) for d in dims[1:]]  # lane-dense
    h0_p = dims_p[1]
    out_p = dims_p[-1]

    # Resident-per-step VMEM (everything except the K-streamed pieces).
    resident = nbytes((tb, h0_p), jnp.float32)               # accumulator
    resident += 2 * nbytes((tb, out_p), jnp.float32)         # output tile
    resident += 2 * nbytes((1, h0_p), jnp.float32)           # layer-0 bias
    for l in range(1, num_layers):
        resident += 2 * nbytes((dims_p[l], dims_p[l + 1]), jnp.bfloat16)
        resident += 2 * nbytes((1, dims_p[l + 1]), jnp.float32)

    # Pick the largest K tile that divides D_in_p and fits the VMEM budget
    # (x tile + layer-0 weight tile are double-buffered).
    tk = 128
    for cand in (4096, 2048, 1024, 512, 256, 128):
        if D_in_p % cand != 0:
            continue
        streamed = 2 * nbytes((tb, cand), jnp.bfloat16)        # x tile
        streamed += 2 * nbytes((cand, h0_p), jnp.bfloat16)     # w0 tile
        if resident + streamed <= vmem_budget_bytes:
            tk = cand
            break

    # ---------------- pad + cast operands (wrapper-side layout plumbing) ----
    xp = jnp.zeros((B_p, D_in_p), jnp.bfloat16).at[:B, :D_in].set(
        x.astype(jnp.bfloat16))

    flat_params = []
    in_specs = [pl.BlockSpec((tb, tk), lambda e, bi, k: (bi, k))]
    for l in range(num_layers):
        din, dout = dims[l], dims[l + 1]
        din_p, dout_p = dims_p[l], dims_p[l + 1]
        w = jnp.zeros((E, din_p, dout_p), jnp.bfloat16)
        w = w.at[:, :din, :dout].set(weights[l].astype(jnp.bfloat16))
        b = jnp.zeros((E, 1, dout_p), jnp.float32)
        b = b.at[:, 0, :dout].set(biases[l].astype(jnp.float32))
        flat_params += [w, b]
        if l == 0:
            # Layer-0 weight is streamed K-tile by K-tile.
            in_specs.append(
                pl.BlockSpec((None, tk, dout_p), lambda e, bi, k: (e, k, 0)))
        else:
            # Tail layers are tiny; whole per-member weight resident per e.
            in_specs.append(
                pl.BlockSpec((None, din_p, dout_p), lambda e, bi, k: (e, 0, 0)))
        in_specs.append(
            pl.BlockSpec((None, 1, dout_p), lambda e, bi, k: (e, 0, 0)))

    out_spec = pl.BlockSpec((None, tb, out_p), lambda e, bi, k: (e, bi, 0))

    grid = (E, B_p // tb, D_in_p // tk)

    # ---------------- VMEM limit / cost estimate ----------------------------
    streamed = 2 * nbytes((tb, tk), jnp.bfloat16)
    streamed += 2 * nbytes((tk, h0_p), jnp.bfloat16)
    vmem_limit = min(int((resident + streamed) * 1.5) + (4 << 20), 64 << 20)

    flops = 2 * E * B_p * sum(
        dims_p[l] * dims_p[l + 1] for l in range(num_layers))
    bytes_accessed = (
        xp.size * 2
        + sum(int(p.size) * jnp.dtype(p.dtype).itemsize for p in flat_params)
        + E * B_p * out_p * 4)
    cost = pl.CostEstimate(flops=int(flops), transcendentals=0,
                           bytes_accessed=int(bytes_accessed))

    kernel = _make_mlp_kernel(num_layers)

    out = pl.pallas_call(
        kernel,
        out_shape=jax.ShapeDtypeStruct((E, B_p, out_p), jnp.float32),
        grid_spec=pltpu.PrefetchScalarGridSpec(
            num_scalar_prefetch=0,
            grid=grid,
            in_specs=in_specs,
            out_specs=out_spec,
            scratch_shapes=[pltpu.VMEM((tb, h0_p), jnp.float32)],
        ),
        compiler_params=pltpu.CompilerParams(
            dimension_semantics=("parallel", "parallel", "arbitrary"),
            vmem_limit_bytes=vmem_limit,
        ),
        cost_estimate=cost,
    )(xp, *flat_params)

    # Strip batch / lane padding.
    return out[:, :B, :num_classes]


def init_ensemble_mlp_params(key, num_ensem, in_dim, hidden_dim, num_classes):
    """Init mimicking nn.Linear default (uniform +/- 1/sqrt(fan_in))."""
    dims = [in_dim] + list(hidden_dim) + [num_classes]
    weights, biases = [], []
    for l in range(len(dims) - 1):
        din, dout = dims[l], dims[l + 1]
        key, kw, kb = jax.random.split(key, 3)
        bound = 1.0 / math.sqrt(din)
        # stored already transposed: (E, in, out)
        w = jax.random.uniform(kw, (num_ensem, din, dout), jnp.float32, -bound, bound)
        b = jax.random.uniform(kb, (num_ensem, dout), jnp.float32, -bound, bound)
        weights.append(w)
        biases.append(b)
    return weights, biases


def reference_forward_bf16(x, weights, biases):
    """Plain-JAX reference with the same dtype policy (bf16 in, f32 acc)."""
    E = weights[0].shape[0]
    num_layers = len(weights)
    xb = x.astype(jnp.bfloat16)
    outs = []
    for e in range(E):
        h = xb
        for l in range(num_layers):
            h32 = jnp.dot(h, weights[l][e].astype(jnp.bfloat16),
                          preferred_element_type=jnp.float32) + biases[l][e]
            if l < num_layers - 1:
                h = jnp.maximum(h32, 0.0).astype(jnp.bfloat16)
            else:
                h = h32
        outs.append(h)
    return jnp.stack(outs, axis=0)


if __name__ == "__main__":
    # Small but module-consistent shapes: input dim is fixed by MLP as 2048*3.
    num_ensem = 2
    in_dim = 2048 * 3          # fixed by MLP.__init__
    hidden_dim = [32]
    num_classes = 10
    batch = 2

    key = jax.random.PRNGKey(0)
    key, kx = jax.random.split(key)
    x = jax.random.normal(kx, (batch, in_dim), jnp.float32)

    weights, biases = init_ensemble_mlp_params(
        key, num_ensem, in_dim, hidden_dim, num_classes)

    out = ensemble_mlp_forward(x, weights, biases)
    out = jax.block_until_ready(out)

    ref = reference_forward_bf16(x, weights, biases)
    assert out.shape == (num_ensem, batch, num_classes), out.shape
    assert jnp.allclose(out, ref, atol=5e-3, rtol=5e-3), "mismatch vs reference"

    # TODO(synk): arch='resnet50' branch (full conv backbone) not implemented; only the MLP arch.
    print("KERNEL_OK")
</pallas_src>

<mosaic_0001>
module attributes {stable_mosaic.version = 11 : i64} {
  func.func @kernel(%arg0: i32, %arg1: i32, %arg2: i32, %arg3: memref<8x2048xbf16, #tpu.memory_space<vmem>>, %arg4: memref<1x2048x128xbf16, #tpu.memory_space<vmem>>, %arg5: memref<1x1x128xf32, #tpu.memory_space<vmem>>, %arg6: memref<1x128x128xbf16, #tpu.memory_space<vmem>>, %arg7: memref<1x1x128xf32, #tpu.memory_space<vmem>>, %arg8: memref<1x8x128xf32, #tpu.memory_space<vmem>>, %arg9: memref<8x128xf32, #tpu.memory_space<vmem>>) attributes {dimension_semantics = [#tpu.dimension_semantics<parallel>, #tpu.dimension_semantics<parallel>, #tpu.dimension_semantics<arbitrary>], iteration_bounds = array<i64: 2, 1, 3>, scalar_prefetch = 0 : i64, scratch_operands = 1 : i64, tpu.core_type = #tpu.core_type<tc>, window_params = [{transform_indices = @transform_0, window_bounds = array<i64: 8, 2048>}, {transform_indices = @transform_1, window_bounds = array<i64: 1, 2048, 128>}, {transform_indices = @transform_2, window_bounds = array<i64: 1, 1, 128>}, {transform_indices = @transform_3, window_bounds = array<i64: 1, 128, 128>}, {transform_indices = @transform_4, window_bounds = array<i64: 1, 1, 128>}, {transform_indices = @transform_5, window_bounds = array<i64: 1, 8, 128>}]} {
    %c0_i32 = arith.constant 0 : i32
    %0 = arith.cmpi eq, %arg2, %c0_i32 : i32
    %1 = arith.extui %0 : i1 to i32
    %c0_i32_0 = arith.constant 0 : i32
    %2 = arith.cmpi ne, %1, %c0_i32_0 : i32
    scf.if %2 {
      %c0_10 = arith.constant 0 : index
      %c0_11 = arith.constant 0 : index
      %c0_12 = arith.constant 0 : index
      %13 = vector.load %arg5[%c0_10, %c0_11, %c0_12] : memref<1x1x128xf32, #tpu.memory_space<vmem>>, vector<1x1x128xf32>
      %14 = vector.shape_cast %13 : vector<1x1x128xf32> to vector<1x128xf32>
      %15 = vector.shape_cast %14 : vector<1x128xf32> to vector<1x128xf32>
      %16 = vector.broadcast %15 : vector<1x128xf32> to vector<8x128xf32>
      %c0_13 = arith.constant 0 : index
      %c0_14 = arith.constant 0 : index
      %17 = vector.load %arg9[%c0_13, %c0_14] : memref<8x128xf32, #tpu.memory_space<vmem>>, vector<8x128xf32>
      tpu.vector_store %arg9[%c0_13, %c0_14], %16 {strides = array<i32>} : memref<8x128xf32, #tpu.memory_space<vmem>>, vector<8x128xf32>,
    } else {
    }
    %c0 = arith.constant 0 : index
    %c0_1 = arith.constant 0 : index
    %3 = vector.load %arg9[%c0, %c0_1] : memref<8x128xf32, #tpu.memory_space<vmem>>, vector<8x128xf32>
    %c0_2 = arith.constant 0 : index
    %c0_3 = arith.constant 0 : index
    %4 = vector.load %arg3[%c0_2, %c0_3] : memref<8x2048xbf16, #tpu.memory_space<vmem>>, vector<8x2048xbf16>
    %c0_4 = arith.constant 0 : index
    %c0_5 = arith.constant 0 : index
    %c0_6 = arith.constant 0 : index
    %5 = vector.load %arg4[%c0_4, %c0_5, %c0_6] : memref<1x2048x128xbf16, #tpu.memory_space<vmem>>, vector<1x2048x128xbf16>
    %6 = vector.shape_cast %5 : vector<1x2048x128xbf16> to vector<2048x128xbf16>
    %cst = arith.constant dense<0.000000e+00> : vector<8x128xf32>
    %7 = tpu.matmul %4, %6, %cst {dimension_numbers = #tpu.dot_dimension_numbers<[1], [0], [0], [1], [0, 0, 1, 1], [], []>} : vector<8x2048xbf16>, vector<2048x128xbf16>, vector<8x128xf32> -> vector<8x128xf32>
    %8 = arith.addf %3, %7 : vector<8x128xf32>
    %c0_7 = arith.constant 0 : index
    %c0_8 = arith.constant 0 : index
    %9 = vector.load %arg9[%c0_7, %c0_8] : memref<8x128xf32, #tpu.memory_space<vmem>>, vector<8x128xf32>
    tpu.vector_store %arg9[%c0_7, %c0_8], %8 {strides = array<i32>} : memref<8x128xf32, #tpu.memory_space<vmem>>, vector<8x128xf32>,
    %c2_i32 = arith.constant 2 : i32
    %10 = arith.cmpi eq, %arg2, %c2_i32 : i32
    %11 = arith.extui %10 : i1 to i32
    %c0_i32_9 = arith.constant 0 : i32
    %12 = arith.cmpi ne, %11, %c0_i32_9 : i32
    scf.if %12 {
      %c0_10 = arith.constant 0 : index
      %c0_11 = arith.constant 0 : index
      %13 = vector.load %arg9[%c0_10, %c0_11] : memref<8x128xf32, #tpu.memory_space<vmem>>, vector<8x128xf32>
      %cst_12 = arith.constant 0.000000e+00 : f32
      %14 = vector.broadcast %cst_12 : f32 to vector<8x128xf32>
      %15 = arith.maximumf %13, %14 : vector<8x128xf32>
      %c0_13 = arith.constant 0 : index
      %c0_14 = arith.constant 0 : index
      %c0_15 = arith.constant 0 : index
      %16 = vector.load %arg6[%c0_13, %c0_14, %c0_15] : memref<1x128x128xbf16, #tpu.memory_space<vmem>>, vector<1x128x128xbf16>
      %17 = vector.shape_cast %16 : vector<1x128x128xbf16> to vector<128x128xbf16>
      %c0_16 = arith.constant 0 : index
      %c0_17 = arith.constant 0 : index
      %c0_18 = arith.constant 0 : index
      %18 = vector.load %arg7[%c0_16, %c0_17, %c0_18] : memref<1x1x128xf32, #tpu.memory_space<vmem>>, vector<1x1x128xf32>
      %19 = vector.shape_cast %18 : vector<1x1x128xf32> to vector<1x128xf32>
      %20 = arith.truncf %15 : vector<8x128xf32> to vector<8x128xbf16>
      %cst_19 = arith.constant dense<0.000000e+00> : vector<8x128xf32>
      %21 = tpu.matmul %20, %17, %cst_19 {dimension_numbers = #tpu.dot_dimension_numbers<[1], [0], [0], [1], [0, 0, 1, 1], [], []>} : vector<8x128xbf16>, vector<128x128xbf16>, vector<8x128xf32> -> vector<8x128xf32>
      %22 = vector.broadcast %19 : vector<1x128xf32> to vector<8x128xf32>
      %23 = arith.addf %21, %22 : vector<8x128xf32>
      %c0_20 = arith.constant 0 : index
      %c0_21 = arith.constant 0 : index
      %c0_22 = arith.constant 0 : index
      %24 = vector.load %arg8[%c0_20, %c0_21, %c0_22] : memref<1x8x128xf32, #tpu.memory_space<vmem>>, vector<1x8x128xf32>
      %25 = vector.shape_cast %24 : vector<1x8x128xf32> to vector<8x128xf32>
      %26 = vector.shape_cast %23 : vector<8x128xf32> to vector<1x8x128xf32>
      tpu.vector_store %arg8[%c0_20, %c0_21, %c0_22], %26 {strides = array<i32>} : memref<1x8x128xf32, #tpu.memory_space<vmem>>, vector<1x8x128xf32>,
    } else {
    }
    return
  }
  func.func @transform_0(%arg0: i32, %arg1: i32, %arg2: i32) -> (i32, i32) {
    %c0_i32 = arith.constant 0 : i32
    return %arg1, %arg2 : i32, i32
  }
  func.func @transform_1(%arg0: i32, %arg1: i32, %arg2: i32) -> (i32, i32, i32) {
    %c0_i32 = arith.constant 0 : i32
    %c0_i32_0 = arith.constant 0 : i32
    return %arg0, %arg2, %c0_i32 : i32, i32, i32
  }
  func.func @transform_2(%arg0: i32, %arg1: i32, %arg2: i32) -> (i32, i32, i32) {
    %c0_i32 = arith.constant 0 : i32
    %c0_i32_0 = arith.constant 0 : i32
    %c0_i32_1 = arith.constant 0 : i32
    return %arg0, %c0_i32, %c0_i32_0 : i32, i32, i32
  }
  func.func @transform_3(%arg0: i32, %arg1: i32, %arg2: i32) -> (i32, i32, i32) {
    %c0_i32 = arith.constant 0 : i32
    %c0_i32_0 = arith.constant 0 : i32
    %c0_i32_1 = arith.constant 0 : i32
    return %arg0, %c0_i32, %c0_i32_0 : i32, i32, i32
  }
  func.func @transform_4(%arg0: i32, %arg1: i32, %arg2: i32) -> (i32, i32, i32) {
    %c0_i32 = arith.constant 0 : i32
    %c0_i32_0 = arith.constant 0 : i32
    %c0_i32_1 = arith.constant 0 : i32
    return %arg0, %c0_i32, %c0_i32_0 : i32, i32, i32
  }
  func.func @transform_5(%arg0: i32, %arg1: i32, %arg2: i32) -> (i32, i32, i32) {
    %c0_i32 = arith.constant 0 : i32
    %c0_i32_0 = arith.constant 0 : i32
    return %arg0, %arg1, %c0_i32 : i32, i32, i32
  }
}

</mosaic_0001>

<bundles_post_ra>
// kernel: tpu_custom_call.1
= control target key start
LH: loop header
LB: loop body
LE: loop exit
PB: predicated region body
PF: predicated region fallthrough
CT: control target
= control target key end

     0   :  { %s3823_s0 = inlined_call_operand.hbm [shape: bf16[8,6144], index: 0, kind: input, shape index: {}]   ;;  %s3824_s1 = inlined_call_operand.hbm [shape: bf16[2,6144,128], index: 1, kind: input, shape index: {}]   ;;  %s3825_s2 = inlined_call_operand.hbm [shape: f32[2,1,128], index: 2, kind: input, shape index: {}]   ;;  %s3826_s3 = inlined_call_operand.hbm [shape: bf16[2,128,128], index: 3, kind: input, shape index: {}]   ;;  %s3827_s4 = inlined_call_operand.hbm [shape: f32[2,1,128], index: 4, kind: input, shape index: {}]   ;;  %s3828_s5 = inlined_call_operand.hbm [shape: f32[2,8,128], index: 5, kind: output, shape index: {}]  }
   0x1   :  { %3850 = sst [smem:[#allocation30_spill]] %s3824_s1 }
   0x2   :  { %3851 = sst [smem:[#allocation31_spill]] %s3826_s3 }
   0x3   :  { %3852 = sst [smem:[#allocation32_spill]] %s3827_s4 }
   0x4   :  { %3853 = sst [smem:[#allocation33_spill]] %s3828_s5 }
   0x5   :  { %10 = vsyncpa [#allocation4], 0 }
   0x6   :  { %12 = vsyncpa [#allocation4 + $0x1], 0 }
   0x7   :  { %13 = vsyncpa [#allocation7], 0 }
   0x8   :  { %15 = vsyncpa [#allocation7 + $0x1], 0 }
   0x9   :  { %16 = vsyncpa [#allocation10], 0 }
   0xa   :  { %18 = vsyncpa [#allocation10 + $0x1], 0 }
   0xb   :  { %19 = vsyncpa [#allocation5], 0 }
   0xc   :  { %21 = vsyncpa [#allocation5 + $0x1], 0  ;;  %s3183_s18 = smov 0   ;;  %s3185_s19 = smov 0  }
   0xd   :  { %s3187_s20 = smov 0   ;;  %s3189_s21 = smov 0  }
   0xe   :  { %s3191_s22 = smov 0   ;;  %s3193_s23 = smov 0  }
   0xf   :  { %s3195_s24 = smov 0   ;;  %s3197_s25 = smov 0  }
  0x10   :  { %s3199_s26 = smov 0   ;;  %s3201_s27 = smov 0  }
  0x11   :  { %s3203_s28 = smov 0   ;;  %s3205_s29 = smov 0  }
  0x12   :  { %s3207_s30 = smov 0   ;;  %s3209_s6 = smov 0  }
  0x13 LB: > { %3854 = sst [smem:[#allocation18_spill]] %s3097_s20  ;;  %s39_s7 = sadd.s32 1, %s3133_s29  ;;  %s3141_s6 = sphi %s3209_s6, %s27_s6   ;;  %s3137_s30 = sphi %s3207_s30, %s3925_s30   ;;  %s3133_s29 = sphi %s3205_s29, %s3924_s29   ;;  %s3129_s28 = sphi %s3203_s28, %s3923_s28   ;;  %s3125_s27 = sphi %s3201_s27, %s3912_s27   ;;  %s3121_s26 = sphi %s3199_s26, %s3922_s26   ;;  %s3117_s25 = sphi %s3197_s25, %s3921_s25   ;;  %s3113_s24 = sphi %s3195_s24, %s3920_s24   ;;  %s3109_s23 = sphi %s3193_s23, %s3909_s23   ;;  %s3105_s22 = sphi %s3191_s22, %s3919_s22   ;;  %s3101_s21 = sphi %s3189_s21, %s3918_s21   ;;  %s3097_s20 = sphi %s3187_s20, %s3907_s20   ;;  %s3093_s19 = sphi %s3185_s19, %s3917_s19   ;;  %s3089_s18 = sphi %s3183_s18, %s3916_s18  }
  0x14   : > { %3855 = sst [smem:[#allocation19_spill]] %s3109_s23  ;;  %s46_s8 = sadd.s32 1, %s3137_s30 }
  0x15   : > { %3856 = sst [smem:[#allocation20_spill]] %s3121_s26  ;;  %p40_p0 = scmp.ge.s32.totalorder %s39_s7, 3 }
  0x16   : > { %3857 = sst [smem:[#allocation21_spill]] %s3125_s27  ;;  %p3834_p1 = scmp.eq.s32.totalorder %s3141_s6, 0 }
  0x17   : > { %3858 = sst [smem:[#allocation22_spill]] %s3129_s28  ;;  %s83_s9 = sadd.s32 1, %s3109_s23 }
  0x18   : > { %3859 = sst [smem:[#allocation23_spill]] %s3133_s29  ;;  %p90_p2 = scmp.ne.s32.totalorder %s3109_s23, %s3105_s22 }
  0x19   : > { %s3927_s7 = smov (%p40_p0, %s39_s7), 0  ;;  %s3929_s8 = smov (!%p40_p0, %s46_s8), %s3137_s30 }
  0x1a   : > { %3860 = sst [smem:[#allocation24_spill]] %s3927_s7  ;;  %s3264_s10 = ssub.s32 %s3133_s29, %s3927_s7 }
  0x1b   : > { %p3268_p3 = por %p90_p2, %p3834_p1  ;;  %p48_p4 = scmp.ge.s32.totalorder %s3929_s8, 2 }
  0x1c   : > { %p3833_p6 = scmp.lt.s32.totalorder %s3141_s6, 6  ;;  %s249_s13 = sand.u32 1, %s3109_s23  }
  0x1d   : > { %s3931_s8 = smov (%p48_p4, %s3929_s8), 0  ;;  %s2150_s16 = sshll.u32 %s249_s13, 10 }
  0x1e   : > { %3862 = sst [smem:[#allocation25_spill]] %s3931_s8  ;;  %s3281_s14 = ssub.s32 %s3137_s30, %s3931_s8 }
  0x1f   : > { %s80_s15 = sor.u32 %s3281_s14, %s3264_s10  ;;  %p107_p7 = scmp.eq.s32.totalorder %s3281_s14, 0 }
  0x20   : > { %p81_p8 = scmp.eq.s32.totalorder %s80_s15, 0  ;;  %s2151_s17 = sshll.u32 %s3133_s29, 8 }
  0x21   : > { %s2530_s5 = smul.u32 768, %s3137_s30  ;;  %s251_s28 = scalar_lea.vmem [#allocation6], %s2150_s16 }
  0x22   : > { %s3288_s7 = scalar_select %p81_p8, %s3109_s23, %s83_s9  }
  0x23   : > { %s260_s27 = sshll.u32 %s251_s28, 4  ;;  %p3297_p9 = pnand %p3833_p6, %p3268_p3  ;;  %s3291_s27 = int_to_ptr.vmem [resolvable:$true] %s260_s27 }
  0x24   : > { %3863 = sst [smem:[#allocation26_spill]] %s3288_s7  ;;  %s257_s8 = sadd.s32 %s2530_s5, %s2151_s17 }
  0x25   : > { %s2152_s4 = sshll.u32 %s257_s8, 6  ;;  %s3865_s1 = sld [smem:[#allocation30_spill]] }
  0x26   : > { %s3866_s7 = sand.u32 1, %s3141_s6   ;;  %p2835_p11 = pneg %p3297_p9 }
  0x27   : > { %s3308_s28 = scalar_lea.sflag [#allocation7], %s3866_s7 }
  0x2b   : > { %s3304_s9 = scalar_lea.hbm %s3865_s1, %s2152_s4  ;;  %s2838_s4 = scalar_lea.hbm %s3865_s1, 98304 }
  0x2c   : > { %s2833_s11 = scalar_lea.hbm %s3304_s9, 16384  ;;  %p2839_p0 = scmp.lt.u32.totalorder %s3304_s9, %s3865_s1 }
  0x2d   : > { %p2834_p10 = scmp.ne.s32.totalorder %s3304_s9, %s2833_s11  ;;  %p2840_p2 = scmp.lt.u32.totalorder %s2838_s4, %s2833_s11 }
  0x2e   : > { %p2842_p4 = scmp.lt.u32.totalorder %s2833_s11, %s3304_s9 }
  0x2f   : > { %p2836_p12 = pnand %p2835_p11, %p2834_p10  ;;  %p2841_p3 = por %p2840_p2, %p2839_p0 }
  0x31   : > { %p2837_p13 = pneg %p2836_p12  ;;  %p2843_p8 = por %p2842_p4, %p2841_p3 }
  0x33   : > { %p2844_p5 = pnand %p2843_p8, %p2837_p13 }
  0x35   : > { %2847 = shalt.err (!%p2844_p5)
}
  0x36   : > { %s2848_s7 = scalar_lea.vmem %s3291_s27, 16384  ;;  %s3143_s15 = smov [#allocation6]  }
  0x37   : > { %p2849_p10 = scmp.ne.s32.totalorder %s3291_s27, %s2848_s7  ;;  %s2853_s13 = sshll.u32 %s3143_s15, 4  ;;  %s2854_s13 = int_to_ptr.vmem [resolvable:$false] %s2853_s13 }
  0x38   : > { %s2855_s5 = scalar_lea.vmem %s2854_s13, 32768  ;;  %p2856_p1 = scmp.lt.s32.totalorder %s3291_s27, %s2854_s13 }
  0x39   : > { %p2851_p12 = pnand %p2849_p10, %p2835_p11  ;;  %p2857_p0 = scmp.lt.s32.totalorder %s2855_s5, %s2848_s7 }
  0x3b   : > { %p2852_p6 = pneg %p2851_p12  ;;  %p2858_p2 = por %p2857_p0, %p2856_p1 }
  0x3d   : > { %p2859_p3 = pnand %p2858_p2, %p2852_p6 }
  0x3f   : > { %2862 = shalt.err (!%p2859_p3)
}
  0x40   : > { %s3835_s11 = smov 64   ;;  %s3836_s8 = smov 4  }
  0x41   : > { %2549 = dma.hbm_to_vmem [thread:$0]  (!%p3297_p9), %s3304_s9, 16384, %s3291_s27, %s3308_s28, %s3835_s11, %s3835_s11, %s3836_s8  }
  0x42   : > { %p2158_p1 = scmp.ge.s32.totalorder %s3141_s6, 1  ;;  %p323_p5 = scmp.lt.s32.totalorder %s3141_s6, 7 }
  0x43   : > { %s2144_s16 = sadd.s32 4294967294, %s3141_s6   ;;  %s109_s17 = sadd.s32 1, %s3097_s20 }
  0x44   : > { %p3341_p6 = pnand %p2158_p1, %p323_p5  ;;  %p3838_p11 = scmp.ne.s32.totalorder %s3097_s20, %s3093_s19 }
  0x45   : > { %s3352_s7 = scalar_select %p107_p7, %s3097_s20, %s109_s17  }
  0x46   : > { %s3867_s4 = scalar_select %p3341_p6, 1, 0 }
  0x47   : > { %3868 = sst [smem:[#allocation27_spill]] %s3352_s7  ;;  %p3869_p13 = scmp.eq.s32.totalorder %s3141_s6, 0 }
  0x48   : > { %p3839_p8 = scmp.ne.s32.totalorder %s3093_s19, %s3089_s18  ;;  %p206_p10 = scmp.eq.s32.totalorder %s2144_s16, 5 }
  0x49   : > { %p118_p4 = por %p3838_p11, %p3869_p13  ;;  %s3362_s12 = sand.u32 1, %s3097_s20  }
  0x4a   : > { %p3870_p9 = scmp.lt.s32.totalorder %s3141_s6, 6  ;;  %p3373_p0 = por %p206_p10, %p3839_p8 }
  0x4b   : > { %s2154_s14 = sshll.u32 %s3362_s12, 6  ;;  %s2324_s15 = sshll.u32 %s3137_s30, 10 }
  0x4c   : > { %p3366_p12 = pnand %p3870_p9, %p118_p4  ;;  %s291_s13 = scalar_lea.vmem [#allocation9], %s2154_s14 }
  0x4d   : > { %s3872_s9 = scalar_select %p3373_p0, 1, 0 }
  0x4e   : > { %s3871_s27 = scalar_select %p3366_p12, 1, 0 }
  0x4f   : > { %3873 = sst [smem:[#allocation28_spill]] %s3872_s9  ;;  %s298_s5 = sshll.u32 %s291_s13, 4  ;;  %s3384_s5 = int_to_ptr.vmem [resolvable:$true] %s298_s5 }
  0x50   : > { %s3874_s3 = sld [smem:[#allocation31_spill]]  ;;  %s3875_s8 = sand.u32 1, %s3141_s6  }
  0x51   : > { %s3388_s1 = scalar_lea.sflag [#allocation10], %s3875_s8  ;;  %p3394_p2 = pneg %p3366_p12 }
  0x56   : > { %s3382_s11 = scalar_lea.hbm %s3874_s3, %s2324_s15  ;;  %s2868_s17 = scalar_lea.hbm %s3874_s3, 2048 }
  0x57   : > { %s2863_s23 = scalar_lea.hbm %s3382_s11, 1024  ;;  %p2869_p5 = scmp.lt.u32.totalorder %s3382_s11, %s3874_s3 }
  0x58   : > { %p2864_p7 = scmp.ne.s32.totalorder %s3382_s11, %s2863_s23  ;;  %p2870_p13 = scmp.lt.u32.totalorder %s2868_s17, %s2863_s23 }
  0x59   : > { %p2872_p10 = scmp.lt.u32.totalorder %s2863_s23, %s3382_s11 }
  0x5a   : > { %p2866_p3 = pnand %p3394_p2, %p2864_p7  ;;  %p2871_p4 = por %p2870_p13, %p2869_p5 }
  0x5c   : > { %p2867_p1 = pneg %p2866_p3  ;;  %p2873_p9 = por %p2872_p10, %p2871_p4 }
  0x5e   : > { %p2874_p11 = pnand %p2873_p9, %p2867_p1 }
  0x60   : > { %2877 = shalt.err (!%p2874_p11)
}
  0x61   : > { %s2878_s8 = scalar_lea.vmem %s3384_s5, 1024  ;;  %s3146_s15 = smov [#allocation9]  }
  0x62   : > { %p2879_p7 = scmp.ne.s32.totalorder %s3384_s5, %s2878_s8  ;;  %s2883_s13 = sshll.u32 %s3146_s15, 4  ;;  %s2884_s13 = int_to_ptr.vmem [resolvable:$false] %s2883_s13 }
  0x63   : > { %s2885_s7 = scalar_lea.vmem %s2884_s13, 2048  ;;  %p2886_p0 = scmp.lt.s32.totalorder %s3384_s5, %s2884_s13 }
  0x64   : > { %p2881_p3 = pnand %p2879_p7, %p3394_p2  ;;  %p2887_p6 = scmp.lt.s32.totalorder %s2885_s7, %s2878_s8 }
  0x66   : > { %p2882_p8 = pneg %p2881_p3  ;;  %p2888_p5 = por %p2887_p6, %p2886_p0 }
  0x68   : > { %p2889_p13 = pnand %p2888_p5, %p2882_p8 }
  0x6a   : > { %2892 = shalt.err (!%p2889_p13)
}
  0x6b   : > { %s3877_s23 = smov 4   ;;  %s3878_s17 = smov 64  }
  0x6c   : > { %2555 = dma.hbm_to_vmem [thread:$0]  (!%p3366_p12), %s3382_s11, 1024, %s3384_s5, %s3388_s1, %s3878_s17, %s3878_s17, %s3877_s23  }
  0x6d   : > { %s3422_s16 = sadd.s32 4294967295, %s3141_s6   ;;  %p53_p6 = scmp.eq.s32.totalorder %s3264_s10, 0 }
  0x6e   : > { %s55_s8 = sadd.s32 1, %s3121_s26  ;;  %p62_p11 = scmp.ne.s32.totalorder %s3121_s26, %s3117_s25 }
  0x6f   : > { %s3429_s15 = scalar_select %p53_p6, %s3121_s26, %s55_s8  }
  0x70   : > { %p3880_p8 = scmp.eq.s32.totalorder %s3141_s6, 0  ;;  %p68_p1 = scmp.ne.s32.totalorder %s3117_s25, %s3113_s24 }
  0x71   : > { %3879 = sst [smem:[#allocation29_spill]] %s3429_s15  ;;  %p69_p4 = scmp.eq.s32.totalorder %s3422_s16, 0 }
  0x72   : > { %p3433_p0 = por %p3880_p8, %p62_p11  ;;  %p200_p10 = scmp.eq.s32.totalorder %s3422_s16, 5 }
  0x73   : > { %s226_s11 = sand.u32 1, %s3121_s26   ;;  %s2323_s5 = sshll.u32 %s3133_s29, 10 }
  0x74   : > { %p3443_p9 = por %p69_p4, %p68_p1  ;;  %p3883_p7 = scmp.ne.s32.totalorder %s3105_s22, %s3101_s21 }
  0x75   : > { %p3885_p5 = scmp.ne.s32.totalorder %s3093_s19, %s3089_s18  ;;  %p3887_p6 = scmp.ne.s32.totalorder %s3097_s20, %s3093_s19 }
  0x76   : > { %s3882_s7 = scalar_select %p3443_p9, 1, 0 }
  0x77   : > { %p3450_p3 = por %p3883_p7, %p69_p4  ;;  %p3457_p13 = por %p3885_p5, %p69_p4 }
  0x78   : > { %p3464_p11 = por %p200_p10, %p3887_p6  ;;  %s2147_s17 = sshll.u32 %s226_s11, 6 }
  0x79   : > { %s3884_s10 = scalar_select %p3450_p3, 1, 0 }
  0x7a   : > { %s3886_s23 = scalar_select %p3457_p13, 1, 0 }
  0x7b   : > { %s3888_s24 = scalar_select %p3464_p11, 1, 0 }
  0x7c   : > { %s3471_s29 = scalar_lea.hbm %s3823_s0, %s2323_s5  ;;  %s230_s21 = scalar_lea.vmem [#allocation3], %s2147_s17 }
  0x7d   : > { %s240_s15 = sshll.u32 %s230_s21, 4  ;;  %p3889_p8 = scmp.lt.s32.totalorder %s3141_s6, 6  ;;  %s3481_s15 = int_to_ptr.vmem [resolvable:$true] %s240_s15 }
  0x7e   : > { %s2153_s20 = sshll.u32 %s3137_s30, 4  ;;  %s227_s3 = scalar_lea.sflag [#allocation4], %s226_s11 }
  0x7f   : > { %p3477_p1 = pnand %p3889_p8, %p3433_p0  ;;  %s2893_s5 = scalar_lea.hbm %s3471_s29, 1024 }
  0x80   : > { %p2894_p4 = scmp.ne.s32.totalorder %s3471_s29, %s2893_s5  ;;  %s2898_s8 = scalar_lea.hbm %s3823_s0, 3072 }
  0x81   : > { %p2895_p10 = pneg %p3477_p1  ;;  %p2899_p0 = scmp.lt.u32.totalorder %s3471_s29, %s3823_s0 }
  0x82   : > { %p2900_p6 = scmp.lt.u32.totalorder %s2898_s8, %s2893_s5  ;;  %p2902_p11 = scmp.lt.u32.totalorder %s2893_s5, %s3471_s29 }
  0x83   : > { %p2896_p7 = pnand %p2895_p10, %p2894_p4 }
  0x84   : > { %p2901_p8 = por %p2900_p6, %p2899_p0 }
  0x85   : > { %p2897_p5 = pneg %p2896_p7 }
  0x86   : > { %p2903_p13 = por %p2902_p11, %p2901_p8 }
  0x88   : > { %p2904_p3 = pnand %p2903_p13, %p2897_p5 }
  0x8a   : > { %2907 = shalt.err (!%p2904_p3)
}
  0x8b   : > { %s2908_s11 = scalar_lea.vmem %s3481_s15, 1024  ;;  %s3147_s13 = smov [#allocation3]  }
  0x8c   : > { %p2909_p4 = scmp.ne.s32.totalorder %s3481_s15, %s2908_s11  ;;  %s2913_s17 = sshll.u32 %s3147_s13, 4  ;;  %s2914_s17 = int_to_ptr.vmem [resolvable:$false] %s2913_s17 }
  0x8d   : > { %s2915_s9 = scalar_lea.vmem %s2914_s17, 2048  ;;  %p2916_p12 = scmp.lt.s32.totalorder %s3481_s15, %s2914_s17 }
  0x8e   : > { %p2911_p7 = pnand %p2909_p4, %p2895_p10  ;;  %p2917_p0 = scmp.lt.s32.totalorder %s2915_s9, %s2908_s11 }
  0x90   : > { %p2912_p9 = pneg %p2911_p7  ;;  %p2918_p6 = por %p2917_p0, %p2916_p12 }
  0x92   : > { %p2919_p11 = pnand %p2918_p6, %p2912_p9 }
  0x94   : > { %2922 = shalt.err (!%p2919_p11)
}
  0x95   : > { %2546 = dma.hbm_to_vmem [thread:$0]  (!%p3477_p1), %s3471_s29, 1024, %s3481_s15, %s227_s3  }
  0x96   : > { %s3514_s21 = scalar_lea.hbm %s3825_s2, %s2153_s20  ;;  %s273_s11 = scalar_lea.vmem [#allocation8], %s3362_s12 }
  0x97   : > { %s280_s13 = sshll.u32 %s273_s11, 4  ;;  %s2923_s26 = scalar_lea.hbm %s3514_s21, 16  ;;  %s281_s13 = int_to_ptr.vmem [resolvable:$true] %s280_s13 }
  0x98   : > { %p2924_p12 = scmp.ne.s32.totalorder %s3514_s21, %s2923_s26  ;;  %s2928_s15 = scalar_lea.hbm %s3825_s2, 32 }
  0x99   : > { %p2929_p13 = scmp.lt.u32.totalorder %s3514_s21, %s3825_s2  ;;  %p2930_p1 = scmp.lt.u32.totalorder %s2928_s15, %s2923_s26 }
  0x9a   : > { %p2926_p9 = pnand %p2924_p12, %p3394_p2  ;;  %p2932_p5 = scmp.lt.u32.totalorder %s2923_s26, %s3514_s21 }
  0x9b   : > { %p2931_p10 = por %p2930_p1, %p2929_p13 }
  0x9c   : > { %p2927_p3 = pneg %p2926_p9 }
  0x9d   : > { %p2933_p8 = por %p2932_p5, %p2931_p10 }
  0x9f   : > { %p2934_p4 = pnand %p2933_p8, %p2927_p3 }
  0xa1   : > { %2937 = shalt.err (!%p2934_p4)
}
  0xa2   : > { %s2938_s5 = scalar_lea.vmem %s281_s13, 16  ;;  %s3148_s8 = smov [#allocation8]  }
  0xa3   : > { %p2939_p7 = scmp.ne.s32.totalorder %s281_s13, %s2938_s5  ;;  %s2943_s11 = sshll.u32 %s3148_s8, 4  ;;  %s2944_s11 = int_to_ptr.vmem [resolvable:$false] %s2943_s11 }
  0xa4   : > { %s2945_s17 = scalar_lea.vmem %s2944_s11, 32  ;;  %p2946_p11 = scmp.lt.s32.totalorder %s281_s13, %s2944_s11 }
  0xa5   : > { %p2941_p0 = pnand %p2939_p7, %p3394_p2  ;;  %p2947_p12 = scmp.lt.s32.totalorder %s2945_s17, %s2938_s5 }
  0xa7   : > { %p2942_p6 = pneg %p2941_p0  ;;  %p2948_p9 = por %p2947_p12, %p2946_p11 }
  0xa9   : > { %p2949_p1 = pnand %p2948_p9, %p2942_p6 }
  0xab   : > { %2952 = shalt.err (!%p2949_p1)
}
  0xac   : > { %p3891_p13 = scmp.ne.s32.totalorder %s3871_s27, 0  ;;  %s3892_s15 = sld [smem:[#allocation32_spill]] }
  0xad   : > { %s311_s9 = scalar_lea.vmem [#allocation11], %s3362_s12 }
  0xae   : > { %2552 = dma.hbm_to_vmem [thread:$0]  (!%p3891_p13), %s3514_s21, 16, %s281_s13, %s3308_s28  }
  0xaf   : > { %s318_s5 = sshll.u32 %s311_s9, 4  ;;  %s319_s5 = int_to_ptr.vmem [resolvable:$true] %s318_s5 }
  0xb2   : > { %s3540_s3 = scalar_lea.hbm %s3892_s15, %s2153_s20  ;;  %s2958_s21 = scalar_lea.hbm %s3892_s15, 32 }
  0xb3   : > { %s2953_s8 = scalar_lea.hbm %s3540_s3, 16  ;;  %p2959_p8 = scmp.lt.u32.totalorder %s3540_s3, %s3892_s15 }
  0xb4   : > { %p2954_p3 = scmp.ne.s32.totalorder %s3540_s3, %s2953_s8  ;;  %p2960_p4 = scmp.lt.u32.totalorder %s2958_s21, %s2953_s8 }
  0xb5   : > { %p2962_p0 = scmp.lt.u32.totalorder %s2953_s8, %s3540_s3 }
  0xb6   : > { %p2956_p10 = pnand %p2954_p3, %p3394_p2  ;;  %p2961_p7 = por %p2960_p4, %p2959_p8 }
  0xb8   : > { %p2957_p5 = pneg %p2956_p10  ;;  %p2963_p6 = por %p2962_p0, %p2961_p7 }
  0xba   : > { %p2964_p11 = pnand %p2963_p6, %p2957_p5 }
  0xbc   : > { %2967 = shalt.err (!%p2964_p11)
}
  0xbd   : > { %s2968_s20 = scalar_lea.vmem %s319_s5, 16  ;;  %s3149_s12 = smov [#allocation11]  }
  0xbe   : > { %p2969_p12 = scmp.ne.s32.totalorder %s319_s5, %s2968_s20  ;;  %s2973_s26 = sshll.u32 %s3149_s12, 4  ;;  %s2974_s26 = int_to_ptr.vmem [resolvable:$false] %s2973_s26 }
  0xbf   : > { %s2975_s29 = scalar_lea.vmem %s2974_s26, 32  ;;  %p2976_p3 = scmp.lt.s32.totalorder %s319_s5, %s2974_s26 }
  0xc0   : > { %p2971_p9 = pnand %p2969_p12, %p3394_p2  ;;  %p2977_p10 = scmp.lt.s32.totalorder %s2975_s29, %s2968_s20 }
  0xc2   : > { %p2972_p1 = pneg %p2971_p9  ;;  %p2978_p13 = por %p2977_p10, %p2976_p3 }
  0xc4   : > { %p2979_p4 = pnand %p2978_p13, %p2972_p1 }
  0xc6   : > { %2982 = shalt.err (!%p2979_p4)
}
  0xc7   : > { %p3893_p8 = scmp.ne.s32.totalorder %s3871_s27, 0  ;;  %p3894_p5 = scmp.ne.s32.totalorder %s3867_s4, 0 }
  0xc8   : > { %s329_s14 = sand.u32 (!%p3894_p5), 1, %s3117_s25   ;;  %p3895_p2 = scmp.ne.s32.totalorder (!%p3894_p5), %s3882_s7, 0 }
  0xc9   : > { %2558 = dma.hbm_to_vmem [thread:$0]  (!%p3893_p8), %s3540_s3, 16, %s319_s5, %s3388_s1  }
  0xca   : > { %327 = sbr.rel (%p3894_p5) target bundleno = 842 (0x34a), region = 40  ;;  %s2159_s9 = sshll.u32 (!%p3894_p5), %s329_s14, 6 }
  0xcb   : > { %s330_s8 = scalar_lea.sflag (!%p3894_p5), [#allocation4], %s329_s14  ;;  %s3564_s11 = scalar_lea.vmem (!%p3894_p5), [#allocation3], %s2159_s9 }
  0xd1   : > { %3068 = dma.done.wait (%p3895_p2), %s330_s8, 1024  }
  0xd2   : > { %3070 = vsyncadd (%p3895_p2), %s330_s8, 4294966272  ;;  %s338_s27 = sand.u32 1, %s3422_s16   ;;  %s340_s1 = sand.u32 1, %s3105_s22  }
  0xd3   : > { %s2160_s3 = sshll.u32 %s340_s1, 10  ;;  %s339_s4 = scalar_lea.sflag [#allocation7], %s338_s27 }
  0xd4   : > { %s3572_s5 = scalar_lea.vmem [#allocation6], %s2160_s3  ;;  %p3896_p13 = scmp.ne.s32.totalorder %s3884_s10, 0 }
  0xd6   : > { %3072 = dma.done.wait (%p3896_p13), %s339_s4, 16384  }
  0xd7   : > { %3074 = vsyncadd (%p3896_p13), %s339_s4, 4294950912  ;;  %s3579_s28 = sand.u32 1, %s3093_s19   ;;  %p3897_p7 = scmp.ne.s32.totalorder %s3886_s23, 0 }
  0xd8   : > { %s350_s7 = scalar_lea.vmem [#allocation8], %s3579_s28 }
  0xd9   : > { %3076 = dma.done.wait (%p3897_p7), %s339_s4, 16  }
  0xda   : > { %3078 = vsyncadd (%p3897_p7), %s339_s4, 4294967280  ;;  %s2161_s16 = sshll.u32 %s3579_s28, 6  ;;  %s356_s21 = scalar_lea.sflag [#allocation10], %s338_s27 }
  0xdb   : > { %s3587_s13 = scalar_lea.vmem [#allocation9], %s2161_s16 }
  0xdc   : > { %3080 = dma.done.wait (%p3897_p7), %s356_s21, 1040  }
  0xdd   : > { %3082 = vsyncadd (%p3897_p7), %s356_s21, 4294966256  ;;  %s2162_s10 = sshll.u32 %s3579_s28, 3  ;;  %s367_s17 = scalar_lea.vmem [#allocation11], %s3579_s28 }
  0xde   : > { %s3595_s20 = scalar_lea.vmem [#allocation12], %s2162_s10  ;;  %s3898_s12 = sld [smem:[#allocation21_spill]] }
  0xe4   : > { %p2163_p0 = scmp.ne.s32.totalorder %s3898_s12, 0 }
  0xe5   : > { %v2164_v0 = vld [vmem:[%s350_s7] ss:$0 sm:$0xff] (!%p2163_p0) }
  0xe6   : > { %418 = sbr.rel (%p2163_p0) target bundleno = 237 (0xed), region = 64  ;;  %426 = vst [vmem:[#allocation2] sm:$0xff] (!%p2163_p0), %v2164_v0 }
  0xed PF: > { %v2681_v1 = vld [vmem:[%s3572_s5 + $0x40] sm:$0xff]   ;;  %v2685_v5 = vld [vmem:[%s3572_s5 + $0x48] sm:$0xff]   ;;  %v2689_v9 = vld [vmem:[%s3572_s5 + $0x50] sm:$0xff]   ;;  %s3899_s23 = sld [smem:[#allocation21_spill]] }
  0xee   : > { %v2682_v2 = vld [vmem:[%s3572_s5 + $0xc0] sm:$0xff]   ;;  %2325 = vmatprep.subr.bf16.mxu0 %v2681_v1  ;;  %v2686_v6 = vld [vmem:[%s3572_s5 + $0xc8] sm:$0xff]   ;;  %v2690_v10 = vld [vmem:[%s3572_s5 + $0xd0] sm:$0xff]  }
  0xef   : > { %v2683_v3 = vld [vmem:[%s3572_s5] sm:$0xff]   ;;  %2347 = vmatprep.subr.bf16.mxu1 %v2682_v2  ;;  %v2687_v7 = vld [vmem:[%s3572_s5 + $0x8] sm:$0xff]   ;;  %v2691_v11 = vld [vmem:[%s3572_s5 + $0x10] sm:$0xff]  }
  0xf0   : > { %v2684_v4 = vld [vmem:[%s3572_s5 + $0x80] sm:$0xff]   ;;  %2326 = vmatpush3.bf16.msra.mxu0 %v2683_v3  ;;  %v2688_v8 = vld [vmem:[%s3572_s5 + $0x88] sm:$0xff]   ;;  %v2692_v12 = vld [vmem:[%s3572_s5 + $0x90] sm:$0xff]  }
  0xf1   : > { %2348 = vmatpush3.bf16.msra.mxu1 %v2684_v4  ;;  %2327 = vmatprep.subr.bf16.mxu0 %v2685_v5  ;;  %v2693_v13 = vld [vmem:[%s3572_s5 + $0x58] sm:$0xff]   ;;  %v2697_v17 = vld [vmem:[%s3572_s5 + $0x60] sm:$0xff]   ;;  %v2701_v21 = vld [vmem:[%s3572_s5 + $0x68] sm:$0xff]  }
  0xf2   : > { %2349 = vmatprep.subr.bf16.mxu1 %v2686_v6  ;;  %v2694_v14 = vld [vmem:[%s3572_s5 + $0xd8] sm:$0xff]   ;;  %v2698_v18 = vld [vmem:[%s3572_s5 + $0xe0] sm:$0xff]   ;;  %v2702_v22 = vld [vmem:[%s3572_s5 + $0xe8] sm:$0xff]  }
  0xf3   : > { %v2695_v15 = vld [vmem:[%s3572_s5 + $0x18] sm:$0xff]   ;;  %v2699_v19 = vld [vmem:[%s3572_s5 + $0x20] sm:$0xff]   ;;  %v2703_v23 = vld [vmem:[%s3572_s5 + $0x28] sm:$0xff]   ;;  %p2309_p6 = scmp.ne.s32.totalorder %s3899_s23, 2 }
  0xf4   : > { %2328 = vmatpush3.bf16.msra.mxu0 %v2687_v7  ;;  %v2696_v16 = vld [vmem:[%s3572_s5 + $0x98] sm:$0xff]   ;;  %v2700_v20 = vld [vmem:[%s3572_s5 + $0xa0] sm:$0xff]   ;;  %v2704_v24 = vld [vmem:[%s3572_s5 + $0xa8] sm:$0xff]   ;;  %vm3151_vm0 = vmmov (!%p2309_p6), 0  }
  0xf5   : > { %2350 = vmatpush3.bf16.msra.mxu1 %v2688_v8  ;;  %2329 = vmatprep.subr.bf16.mxu0 %v2689_v9  ;;  %v2705_v25 = vld [vmem:[%s3572_s5 + $0x70] sm:$0xff]   ;;  %v2709_v29 = vld [vmem:[%s3572_s5 + $0x78] sm:$0xff]   ;;  %v428_v33 = vld [vmem:[%s3564_s11] sm:$0xff] }
  0xf6   : > { %2351 = vmatprep.subr.bf16.mxu1 %v2690_v10  ;;  %v2706_v26 = vld [vmem:[%s3572_s5 + $0xf0] sm:$0xff]   ;;  %v2710_v30 = vld [vmem:[%s3572_s5 + $0xf8] sm:$0xff]   ;;  %v429_v34 = vld [vmem:[%s3564_s11 + $0x8] sm:$0xff]  ;;  %v2165_v35 = vcombine.low %v428_v33, %v428_v33  ;;  %v2166_v36 = vcombine.high %v428_v33, %v428_v33 }
  0xf7   : > { %v2707_v27 = vld [vmem:[%s3572_s5 + $0x30] sm:$0xff]   ;;  %v2711_v31 = vld [vmem:[%s3572_s5 + $0x38] sm:$0xff]   ;;  %v2167_v37 = vcombine.low %v429_v34, %v429_v34  ;;  %v2168_v38 = vcombine.high %v429_v34, %v429_v34  ;;  %v2717_v39 = vld [vmem:[%s3572_s5 + $0x140] sm:$0xff]  }
  0xf8   : > { %2330 = vmatpush3.bf16.msra.mxu0 %v2691_v11  ;;  %v2708_v28 = vld [vmem:[%s3572_s5 + $0xb0] sm:$0xff]   ;;  %v2712_v32 = vld [vmem:[%s3572_s5 + $0xb8] sm:$0xff]   ;;  %v2718_v40 = vld [vmem:[%s3572_s5 + $0x1c0] sm:$0xff]   ;;  %1548 = vmatprep.mubr.bf16.mxu0 %v2166_v36 }
  0xf9   : > { %2352 = vmatpush3.bf16.msra.mxu1 %v2692_v12  ;;  %2331 = vmatprep.subr.bf16.mxu0 %v2693_v13  ;;  %v2719_v41 = vld [vmem:[%s3572_s5 + $0x100] sm:$0xff]   ;;  %v2721_v43 = vld [vmem:[%s3572_s5 + $0x148] sm:$0xff]   ;;  %v2725_v47 = vld [vmem:[%s3572_s5 + $0x150] sm:$0xff]  }
  0xfa   : > { %2353 = vmatprep.subr.bf16.mxu1 %v2694_v14  ;;  %1588 = vmatprep.mubr.bf16.mxu1 %v2168_v38  ;;  %v2720_v42 = vld [vmem:[%s3572_s5 + $0x180] sm:$0xff]   ;;  %v2722_v44 = vld [vmem:[%s3572_s5 + $0x1c8] sm:$0xff]   ;;  %v2726_v48 = vld [vmem:[%s3572_s5 + $0x1d0] sm:$0xff]  }
  0xfb   : > { %v2723_v45 = vld [vmem:[%s3572_s5 + $0x108] sm:$0xff]   ;;  %v2727_v49 = vld [vmem:[%s3572_s5 + $0x110] sm:$0xff]   ;;  %v2729_v51 = vld [vmem:[%s3572_s5 + $0x158] sm:$0xff]  }
  0xfc   : > { %2332 = vmatpush3.bf16.msra.mxu0 %v2695_v15  ;;  %v2724_v46 = vld [vmem:[%s3572_s5 + $0x188] sm:$0xff]   ;;  %v2728_v50 = vld [vmem:[%s3572_s5 + $0x190] sm:$0xff]   ;;  %v2730_v52 = vld [vmem:[%s3572_s5 + $0x1d8] sm:$0xff]  }
  0xfd   : > { %2354 = vmatpush3.bf16.msra.mxu1 %v2696_v16  ;;  %2333 = vmatprep.subr.bf16.mxu0 %v2697_v17  ;;  %v2731_v53 = vld [vmem:[%s3572_s5 + $0x118] sm:$0xff]   ;;  %v2733_v55 = vld [vmem:[%s3572_s5 + $0x160] sm:$0xff]   ;;  %v2737_v59 = vld [vmem:[%s3572_s5 + $0x168] sm:$0xff]  }
  0xfe   : > { %2355 = vmatprep.subr.bf16.mxu1 %v2698_v18  ;;  %v2732_v54 = vld [vmem:[%s3572_s5 + $0x198] sm:$0xff]   ;;  %v2734_v56 = vld [vmem:[%s3572_s5 + $0x1e0] sm:$0xff]   ;;  %v2738_v60 = vld [vmem:[%s3572_s5 + $0x1e8] sm:$0xff]  }
  0xff   : > { %v2735_v57 = vld [vmem:[%s3572_s5 + $0x120] sm:$0xff]   ;;  %v2739_v61 = vld [vmem:[%s3572_s5 + $0x128] sm:$0xff]   ;;  %v2741_v63 = vld [vmem:[%s3572_s5 + $0x170] sm:$0xff]  }
 0x100   : > { %2334 = vmatpush3.bf16.msra.mxu0 %v2699_v19  ;;  %v2736_v58 = vld [vmem:[%s3572_s5 + $0x1a0] sm:$0xff]   ;;  %v2740_v62 = vld [vmem:[%s3572_s5 + $0x1a8] sm:$0xff]   ;;  %v2742_v0 = vld [vmem:[%s3572_s5 + $0x1f0] sm:$0xff]  }
 0x101   : > { %2356 = vmatpush3.bf16.msra.mxu1 %v2700_v20  ;;  %2335 = vmatprep.subr.bf16.mxu0 %v2701_v21  ;;  %v2743_v1 = vld [vmem:[%s3572_s5 + $0x130] sm:$0xff]   ;;  %v2745_v3 = vld [vmem:[%s3572_s5 + $0x178] sm:$0xff]   ;;  %v2753_v13 = vld [vmem:[%s3572_s5 + $0x240] sm:$0xff]  }
 0x102   : > { %2357 = vmatprep.subr.bf16.mxu1 %v2702_v22  ;;  %v2744_v2 = vld [vmem:[%s3572_s5 + $0x1b0] sm:$0xff]   ;;  %v2746_v4 = vld [vmem:[%s3572_s5 + $0x1f8] sm:$0xff]   ;;  %v2754_v14 = vld [vmem:[%s3572_s5 + $0x2c0] sm:$0xff]  }
 0x103   : > { %v2747_v5 = vld [vmem:[%s3572_s5 + $0x138] sm:$0xff]   ;;  %v430_v7 = vld [vmem:[%s3564_s11 + $0x10] sm:$0xff]  ;;  %v2755_v15 = vld [vmem:[%s3572_s5 + $0x200] sm:$0xff]  }
 0x104   : > { %2336 = vmatpush3.bf16.msra.mxu0 %v2703_v23  ;;  %v2748_v6 = vld [vmem:[%s3572_s5 + $0x1b8] sm:$0xff]   ;;  %v2169_v8 = vcombine.low %v430_v7, %v430_v7  ;;  %v2170_v9 = vcombine.high %v430_v7, %v430_v7  ;;  %v2756_v16 = vld [vmem:[%s3572_s5 + $0x280] sm:$0xff]   ;;  %v2757_v17 = vld [vmem:[%s3572_s5 + $0x248] sm:$0xff]  }
 0x105   : > { %2358 = vmatpush3.bf16.msra.mxu1 %v2704_v24  ;;  %2337 = vmatprep.subr.bf16.mxu0 %v2705_v25  ;;  %v431_v10 = vld [vmem:[%s3564_s11 + $0x18] sm:$0xff]  ;;  %v2758_v18 = vld [vmem:[%s3572_s5 + $0x2c8] sm:$0xff]   ;;  %v2761_v21 = vld [vmem:[%s3572_s5 + $0x250] sm:$0xff]  }
 0x106   : > { %2359 = vmatprep.subr.bf16.mxu1 %v2706_v26  ;;  %v2171_v11 = vcombine.low %v431_v10, %v431_v10  ;;  %v2172_v12 = vcombine.high %v431_v10, %v431_v10  ;;  %v2759_v19 = vld [vmem:[%s3572_s5 + $0x208] sm:$0xff]   ;;  %v2762_v22 = vld [vmem:[%s3572_s5 + $0x2d0] sm:$0xff]   ;;  %v2765_v25 = vld [vmem:[%s3572_s5 + $0x258] sm:$0xff]  }
 0x107   : > { %v2760_v20 = vld [vmem:[%s3572_s5 + $0x288] sm:$0xff]   ;;  %v2763_v23 = vld [vmem:[%s3572_s5 + $0x210] sm:$0xff]   ;;  %v2766_v26 = vld [vmem:[%s3572_s5 + $0x2d8] sm:$0xff]  }
 0x108   : > { %2338 = vmatpush3.bf16.msra.mxu0 %v2707_v27  ;;  %v2764_v24 = vld [vmem:[%s3572_s5 + $0x290] sm:$0xff]   ;;  %v2767_v27 = vld [vmem:[%s3572_s5 + $0x218] sm:$0xff]   ;;  %v2773_v33 = vld [vmem:[%s3572_s5 + $0x268] sm:$0xff]  }
 0x109   : > { %2360 = vmatpush3.bf16.msra.mxu1 %v2708_v28  ;;  %2339 = vmatprep.subr.bf16.mxu0 %v2709_v29  ;;  %v2768_v28 = vld [vmem:[%s3572_s5 + $0x298] sm:$0xff]   ;;  %v2769_v29 = vld [vmem:[%s3572_s5 + $0x260] sm:$0xff]   ;;  %v2774_v34 = vld [vmem:[%s3572_s5 + $0x2e8] sm:$0xff]  }
 0x10a   : > { %2361 = vmatprep.subr.bf16.mxu1 %v2710_v30  ;;  %v2770_v30 = vld [vmem:[%s3572_s5 + $0x2e0] sm:$0xff]   ;;  %v2776_v36 = vld [vmem:[%s3572_s5 + $0x2a8] sm:$0xff]   ;;  %v2778_v38 = vld [vmem:[%s3572_s5 + $0x2f0] sm:$0xff]  }
 0x10b   : > { %v2809_v7 = vld [vmem:[%s3572_s5 + $0x368] sm:$0xff]  }
 0x10c   : > { %2340 = vmatpush3.bf16.msra.mxu0 %v2711_v31  ;;  %v2771_v31 = vld [vmem:[%s3572_s5 + $0x220] sm:$0xff]   ;;  %v2812_v10 = vld [vmem:[%s3572_s5 + $0x3a8] sm:$0xff]  }
 0x10d   : > { %2362 = vmatpush3.bf16.msra.mxu1 %v2712_v32  ;;  %2369 = vmatprep.subr.bf16.mxu0 %v2717_v39  ;;  %v2772_v32 = vld [vmem:[%s3572_s5 + $0x2a0] sm:$0xff]   ;;  %v2779_v39 = vld [vmem:[%s3572_s5 + $0x230] sm:$0xff]  }
 0x10e   : > { %2391 = vmatprep.subr.bf16.mxu1 %v2718_v40  ;;  %v2780_v40 = vld [vmem:[%s3572_s5 + $0x2b0] sm:$0xff]  }
 0x10f   : > { %1549 = vmatmul.mubr.bf16.vlgmr.msra.gmra.mrb[0].mxu0 %v2165_v35  ;;  %v2775_v35 = vld [vmem:[%s3572_s5 + $0x228] sm:$0xff]  }
 0x110   : > { %1589 = vmatmul.mubr.bf16.vlgmr.msra.gmra.mrb[0].mxu1 %v2167_v37  ;;  %2370 = vmatpush3.bf16.msra.mxu0 %v2719_v41  ;;  %v2777_v37 = vld [vmem:[%s3572_s5 + $0x270] sm:$0xff]   ;;  %v2781_v41 = vld [vmem:[%s3572_s5 + $0x278] sm:$0xff]  }
 0x111   : > { %2392 = vmatpush3.bf16.msra.mxu1 %v2720_v42  ;;  %2371 = vmatprep.subr.bf16.mxu0 %v2721_v43  ;;  %v2782_v42 = vld [vmem:[%s3572_s5 + $0x2f8] sm:$0xff]  }
 0x112   : > { %2393 = vmatprep.subr.bf16.mxu1 %v2722_v44  ;;  %1628 = vmatprep.mubr.bf16.mxu0 %v2170_v9  ;;  %v2783_v43 = vld [vmem:[%s3572_s5 + $0x238] sm:$0xff]   ;;  %v2811_v9 = vld [vmem:[%s3572_s5 + $0x328] sm:$0xff]  }
 0x113   : > { %1668 = vmatprep.mubr.bf16.mxu1 %v2172_v12  ;;  %v2784_v44 = vld [vmem:[%s3572_s5 + $0x2b8] sm:$0xff]   ;;  %v2814_v12 = vld [vmem:[%s3572_s5 + $0x3f0] sm:$0xff]  }
 0x114   : > { %2372 = vmatpush3.bf16.msra.mxu0 %v2723_v45  ;;  %v432_v45 = vld [vmem:[%s3564_s11 + $0x20] sm:$0xff] }
 0x115   : > { %2394 = vmatpush3.bf16.msra.mxu1 %v2724_v46  ;;  %2373 = vmatprep.subr.bf16.mxu0 %v2725_v47  ;;  %v433_v46 = vld [vmem:[%s3564_s11 + $0x28] sm:$0xff]  ;;  %v2173_v47 = vcombine.low %v432_v45, %v432_v45 }
 0x116   : > { %2395 = vmatprep.subr.bf16.mxu1 %v2726_v48  ;;  %v2174_v48 = vcombine.high %v432_v45, %v432_v45 }
 0x118   : > { %2374 = vmatpush3.bf16.msra.mxu0 %v2727_v49  ;;  %v2175_v49 = vcombine.low %v433_v46, %v433_v46 }
 0x119   : > { %2396 = vmatpush3.bf16.msra.mxu1 %v2728_v50  ;;  %2375 = vmatprep.subr.bf16.mxu0 %v2729_v51  ;;  %v2176_v50 = vcombine.high %v433_v46, %v433_v46  ;;  %v2789_v51 = vld [vmem:[%s3572_s5 + $0x340] sm:$0xff]  }
 0x11a   : > { %2397 = vmatprep.subr.bf16.mxu1 %v2730_v52  ;;  %v2790_v52 = vld [vmem:[%s3572_s5 + $0x3c0] sm:$0xff]  }
 0x11c   : > { %2376 = vmatpush3.bf16.msra.mxu0 %v2731_v53  ;;  %v2791_v53 = vld [vmem:[%s3572_s5 + $0x300] sm:$0xff]  }
 0x11d   : > { %2398 = vmatpush3.bf16.msra.mxu1 %v2732_v54  ;;  %2377 = vmatprep.subr.bf16.mxu0 %v2733_v55  ;;  %v2792_v54 = vld [vmem:[%s3572_s5 + $0x380] sm:$0xff]   ;;  %v2793_v55 = vld [vmem:[%s3572_s5 + $0x348] sm:$0xff]  }
 0x11e   : > { %2399 = vmatprep.subr.bf16.mxu1 %v2734_v56  ;;  %v2794_v56 = vld [vmem:[%s3572_s5 + $0x3c8] sm:$0xff]  }
 0x120   : > { %2378 = vmatpush3.bf16.msra.mxu0 %v2735_v57  ;;  %v2795_v57 = vld [vmem:[%s3572_s5 + $0x308] sm:$0xff]  }
 0x121   : > { %2400 = vmatpush3.bf16.msra.mxu1 %v2736_v58  ;;  %2379 = vmatprep.subr.bf16.mxu0 %v2737_v59  ;;  %v2796_v58 = vld [vmem:[%s3572_s5 + $0x388] sm:$0xff]   ;;  %v2797_v59 = vld [vmem:[%s3572_s5 + $0x350] sm:$0xff]  }
 0x122   : > { %2401 = vmatprep.subr.bf16.mxu1 %v2738_v60  ;;  %v2798_v60 = vld [vmem:[%s3572_s5 + $0x3d0] sm:$0xff]  }
 0x124   : > { %2380 = vmatpush3.bf16.msra.mxu0 %v2739_v61  ;;  %v2799_v61 = vld [vmem:[%s3572_s5 + $0x310] sm:$0xff]  }
 0x125   : > { %2402 = vmatpush3.bf16.msra.mxu1 %v2740_v62  ;;  %2381 = vmatprep.subr.bf16.mxu0 %v2741_v63  ;;  %v2800_v62 = vld [vmem:[%s3572_s5 + $0x390] sm:$0xff]   ;;  %v2801_v63 = vld [vmem:[%s3572_s5 + $0x358] sm:$0xff]  }
 0x126   : > { %2403 = vmatprep.subr.bf16.mxu1 %v2742_v0  ;;  %v2802_v0 = vld [vmem:[%s3572_s5 + $0x3d8] sm:$0xff]  }
 0x128   : > { %2382 = vmatpush3.bf16.msra.mxu0 %v2743_v1  ;;  %v2803_v1 = vld [vmem:[%s3572_s5 + $0x318] sm:$0xff]  }
 0x129   : > { %2404 = vmatpush3.bf16.msra.mxu1 %v2744_v2  ;;  %2383 = vmatprep.subr.bf16.mxu0 %v2745_v3  ;;  %v2804_v2 = vld [vmem:[%s3572_s5 + $0x398] sm:$0xff]   ;;  %v2805_v3 = vld [vmem:[%s3572_s5 + $0x360] sm:$0xff]  }
 0x12a   : > { %2405 = vmatprep.subr.bf16.mxu1 %v2746_v4  ;;  %v2806_v4 = vld [vmem:[%s3572_s5 + $0x3e0] sm:$0xff]  }
 0x12c   : > { %2384 = vmatpush3.bf16.msra.mxu0 %v2747_v5  ;;  %v2807_v5 = vld [vmem:[%s3572_s5 + $0x320] sm:$0xff]  }
 0x12d   : > { %2406 = vmatpush3.bf16.msra.mxu1 %v2748_v6  ;;  %2413 = vmatprep.subr.bf16.mxu0 %v2753_v13  ;;  %v2808_v6 = vld [vmem:[%s3572_s5 + $0x3a0] sm:$0xff]   ;;  %v2815_v13 = vld [vmem:[%s3572_s5 + $0x330] sm:$0xff]  }
 0x12e   : > { %2435 = vmatprep.subr.bf16.mxu1 %v2754_v14  ;;  %v2816_v14 = vld [vmem:[%s3572_s5 + $0x3b0] sm:$0xff]  }
 0x12f   : > { %1629 = vmatmul.mubr.bf16.vlgmr.msra.gmra.mrb[4].mxu0 %v2169_v8  ;;  %v2810_v8 = vld [vmem:[%s3572_s5 + $0x3e8] sm:$0xff]  }
 0x130   : > { %1669 = vmatmul.mubr.bf16.vlgmr.msra.gmra.mrb[4].mxu1 %v2171_v11  ;;  %2414 = vmatpush3.bf16.msra.mxu0 %v2755_v15  ;;  %v2813_v11 = vld [vmem:[%s3572_s5 + $0x370] sm:$0xff]   ;;  %v2817_v15 = vld [vmem:[%s3572_s5 + $0x378] sm:$0xff]  }
 0x131   : > { %2436 = vmatpush3.bf16.msra.mxu1 %v2756_v16  ;;  %2415 = vmatprep.subr.bf16.mxu0 %v2757_v17  ;;  %v2818_v16 = vld [vmem:[%s3572_s5 + $0x3f8] sm:$0xff]  }
 0x132   : > { %2437 = vmatprep.subr.bf16.mxu1 %v2758_v18  ;;  %1708 = vmatprep.mubr.bf16.mxu0 %v2174_v48  ;;  %v2819_v17 = vld [vmem:[%s3572_s5 + $0x338] sm:$0xff]  }
 0x133   : > { %1748 = vmatprep.mubr.bf16.mxu1 %v2176_v50  ;;  %v2820_v18 = vld [vmem:[%s3572_s5 + $0x3b8] sm:$0xff]  }
 0x134   : > { %2416 = vmatpush3.bf16.msra.mxu0 %v2759_v19  ;;  %v434_v19 = vld [vmem:[%s3564_s11 + $0x30] sm:$0xff] }
 0x135   : > { %2438 = vmatpush3.bf16.msra.mxu1 %v2760_v20  ;;  %2417 = vmatprep.subr.bf16.mxu0 %v2761_v21  ;;  %v435_v20 = vld [vmem:[%s3564_s11 + $0x38] sm:$0xff]  ;;  %v2177_v21 = vcombine.low %v434_v19, %v434_v19 }
 0x136   : > { %2439 = vmatprep.subr.bf16.mxu1 %v2762_v22  ;;  %v2178_v22 = vcombine.high %v434_v19, %v434_v19 }
 0x138   : > { %2418 = vmatpush3.bf16.msra.mxu0 %v2763_v23  ;;  %v2179_v23 = vcombine.low %v435_v20, %v435_v20 }
 0x139   : > { %2440 = vmatpush3.bf16.msra.mxu1 %v2764_v24  ;;  %2419 = vmatprep.subr.bf16.mxu0 %v2765_v25  ;;  %v2180_v24 = vcombine.high %v435_v20, %v435_v20  ;;  %v2832_v20 = vld [vmem:[%s3587_s13 + $0x38] sm:$0xff] (!%p2309_p6)  }
 0x13a   : > { %2441 = vmatprep.subr.bf16.mxu1 %v2766_v26 }
 0x13c   : > { %2420 = vmatpush3.bf16.msra.mxu0 %v2767_v27 }
 0x13d   : > { %2442 = vmatpush3.bf16.msra.mxu1 %v2768_v28  ;;  %2421 = vmatprep.subr.bf16.mxu0 %v2769_v29 }
 0x13e   : > { %2443 = vmatprep.subr.bf16.mxu1 %v2770_v30 }
 0x140   : > { %2422 = vmatpush3.bf16.msra.mxu0 %v2771_v31 }
 0x141   : > { %2444 = vmatpush3.bf16.msra.mxu1 %v2772_v32  ;;  %2423 = vmatprep.subr.bf16.mxu0 %v2773_v33 }
 0x142   : > { %2445 = vmatprep.subr.bf16.mxu1 %v2774_v34 }
 0x144   : > { %2424 = vmatpush3.bf16.msra.mxu0 %v2775_v35 }
 0x145   : > { %2446 = vmatpush3.bf16.msra.mxu1 %v2776_v36  ;;  %2425 = vmatprep.subr.bf16.mxu0 %v2777_v37 }
 0x146   : > { %2447 = vmatprep.subr.bf16.mxu1 %v2778_v38 }
 0x148   : > { %2426 = vmatpush3.bf16.msra.mxu0 %v2779_v39 }
 0x149   : > { %2448 = vmatpush3.bf16.msra.mxu1 %v2780_v40  ;;  %2427 = vmatprep.subr.bf16.mxu0 %v2781_v41 }
 0x14a   : > { %2449 = vmatprep.subr.bf16.mxu1 %v2782_v42 }
 0x14c   : > { %2428 = vmatpush3.bf16.msra.mxu0 %v2783_v43 }
 0x14d   : > { %2450 = vmatpush3.bf16.msra.mxu1 %v2784_v44  ;;  %2457 = vmatprep.subr.bf16.mxu0 %v2789_v51 }
 0x14e   : > { %2479 = vmatprep.subr.bf16.mxu1 %v2790_v52 }
 0x14f   : > { %1709 = vmatmul.mubr.bf16.vlgmr.msra.gmra.mrb[8].mxu0 %v2173_v47 }
 0x150   : > { %1749 = vmatmul.mubr.bf16.vlgmr.msra.gmra.mrb[8].mxu1 %v2175_v49  ;;  %2458 = vmatpush3.bf16.msra.mxu0 %v2791_v53 }
 0x151   : > { %2480 = vmatpush3.bf16.msra.mxu1 %v2792_v54  ;;  %2459 = vmatprep.subr.bf16.mxu0 %v2793_v55 }
 0x152   : > { %2481 = vmatprep.subr.bf16.mxu1 %v2794_v56  ;;  %1788 = vmatprep.mubr.bf16.mxu0 %v2178_v22  ;;  %v2310_v22 = vld [vmem:[%s367_s17] ss:$0 sm:$0xff] (!%p2309_p6) }
 0x153   : > { %1828 = vmatprep.mubr.bf16.mxu1 %v2180_v24 }
 0x154   : > { %2460 = vmatpush3.bf16.msra.mxu0 %v2795_v57 }
 0x155   : > { %2482 = vmatpush3.bf16.msra.mxu1 %v2796_v58  ;;  %2461 = vmatprep.subr.bf16.mxu0 %v2797_v59 }
 0x156   : > { %2483 = vmatprep.subr.bf16.mxu1 %v2798_v60 }
 0x158   : > { %2462 = vmatpush3.bf16.msra.mxu0 %v2799_v61 }
 0x159   : > { %2484 = vmatpush3.bf16.msra.mxu1 %v2800_v62  ;;  %2463 = vmatprep.subr.bf16.mxu0 %v2801_v63 }
 0x15a   : > { %2485 = vmatprep.subr.bf16.mxu1 %v2802_v0 }
 0x15c   : > { %2464 = vmatpush3.bf16.msra.mxu0 %v2803_v1 }
 0x15d   : > { %2486 = vmatpush3.bf16.msra.mxu1 %v2804_v2  ;;  %2465 = vmatprep.subr.bf16.mxu0 %v2805_v3 }
 0x15e   : > { %2487 = vmatprep.subr.bf16.mxu1 %v2806_v4 }
 0x160   : > { %2466 = vmatpush3.bf16.msra.mxu0 %v2807_v5 }
 0x161   : > { %2488 = vmatpush3.bf16.msra.mxu1 %v2808_v6  ;;  %2467 = vmatprep.subr.bf16.mxu0 %v2809_v7  ;;  %v427_v7 = vld [vmem:[#allocation2] sm:$0xff] }
 0x162   : > { %2489 = vmatprep.subr.bf16.mxu1 %v2810_v8 }
 0x164   : > { %2468 = vmatpush3.bf16.msra.mxu0 %v2811_v9 }
 0x165   : > { %2490 = vmatpush3.bf16.msra.mxu1 %v2812_v10  ;;  %2469 = vmatprep.subr.bf16.mxu0 %v2813_v11  ;;  %v2825_v10 = vld [vmem:[%s3587_s13] sm:$0xff] (!%p2309_p6)   ;;  %v3150_v11 = vmov (!%p2309_p6), 0.0  }
 0x166   : > { %2491 = vmatprep.subr.bf16.mxu1 %v2814_v12  ;;  %v2826_v12 = vld [vmem:[%s3587_s13 + $0x8] sm:$0xff] (!%p2309_p6)  }
 0x168   : > { %2470 = vmatpush3.bf16.msra.mxu0 %v2815_v13  ;;  %v2827_v13 = vld [vmem:[%s3587_s13 + $0x10] sm:$0xff] (!%p2309_p6)  }
 0x169   : > { %2492 = vmatpush3.bf16.msra.mxu1 %v2816_v14  ;;  %2471 = vmatprep.subr.bf16.mxu0 %v2817_v15  ;;  %v2828_v14 = vld [vmem:[%s3587_s13 + $0x18] sm:$0xff] (!%p2309_p6)   ;;  %v2829_v15 = vld [vmem:[%s3587_s13 + $0x20] sm:$0xff] (!%p2309_p6)  }
 0x16a   : > { %2493 = vmatprep.subr.bf16.mxu1 %v2818_v16  ;;  %v2830_v16 = vld [vmem:[%s3587_s13 + $0x28] sm:$0xff] (!%p2309_p6)  }
 0x16c   : > { %2472 = vmatpush3.bf16.msra.mxu0 %v2819_v17  ;;  %v2831_v17 = vld [vmem:[%s3587_s13 + $0x30] sm:$0xff] (!%p2309_p6)  }
 0x16d   : > { %2494 = vmatpush3.bf16.msra.mxu1 %v2820_v18  ;;  %2510 = vmatprep.subr.bf16.mxu0 (!%p2309_p6), %v3150_v11 }
 0x16f   : > { %1789 = vmatmul.mubr.bf16.vlgmr.msra.gmra.mrb[12].mxu0 %v2177_v21 }
 0x170   : > { %1829 = vmatmul.mubr.bf16.vlgmr.msra.gmra.mrb[12].mxu1 %v2179_v23  ;;  %2511 = vmatpush3.bf16.msra.mxu0 (!%p2309_p6), %v2825_v10 }
 0x171   : > { %2526 = vmatprep.mubr.msk.bf16.mxu0 (!%p2309_p6), %vm3151_vm0, %v3150_v11  ;;  %2512 = vmatprep.subr.bf16.mxu0 (!%p2309_p6), %v3150_v11 }
 0x174   : > { %2513 = vmatpush3.bf16.msra.mxu0 (!%p2309_p6), %v2826_v12 }
 0x175   : > { %2514 = vmatprep.subr.bf16.mxu0 (!%p2309_p6), %v3150_v11 }
 0x178   : > { %2515 = vmatpush3.bf16.msra.mxu0 (!%p2309_p6), %v2827_v13 }
 0x179   : > { %2516 = vmatprep.subr.bf16.mxu0 (!%p2309_p6), %v3150_v11 }
 0x17c   : > { %2517 = vmatpush3.bf16.msra.mxu0 (!%p2309_p6), %v2828_v14 }
 0x17d   : > { %2518 = vmatprep.subr.bf16.mxu0 (!%p2309_p6), %v3150_v11 }
 0x180   : > { %2519 = vmatpush3.bf16.msra.mxu0 (!%p2309_p6), %v2829_v15 }
 0x181   : > { %2520 = vmatprep.subr.bf16.mxu0 (!%p2309_p6), %v3150_v11 }
 0x184   : > { %2521 = vmatpush3.bf16.msra.mxu0 (!%p2309_p6), %v2830_v16 }
 0x185   : > { %2522 = vmatprep.subr.bf16.mxu0 (!%p2309_p6), %v3150_v11 }
 0x188   : > { %2523 = vmatpush3.bf16.msra.mxu0 (!%p2309_p6), %v2831_v17 }
 0x189   : > { %2524 = vmatprep.subr.bf16.mxu0 (!%p2309_p6), %v3150_v11 }
 0x18c   : > { %2525 = vmatpush3.bf16.msra.mxu0 (!%p2309_p6), %v2832_v20 }
 0x1e2   : > { %v2341_v25 = vpop.f32.mrb[0].mxu0 }
 0x1e3   : > { %v2363_v26 = vpop.f32.mrb[0].mxu1  ;;  %v2342_v27 = vpop.f32.mrb[1].mxu0 }
 0x1e4   : > { %v2364_v28 = vpop.f32.mrb[1].mxu1  ;;  %v2343_v29 = vadd.f32 %v2342_v27, %v2341_v25  ;;  %v2344_v31 = vpop.f32.mrb[2].mxu0 }
 0x1e5   : > { %v2365_v30 = vadd.f32 %v2364_v28, %v2363_v26  ;;  %v2366_v32 = vpop.f32.mrb[2].mxu1  ;;  %v2345_v33 = vpop.f32.mrb[3].mxu0 }
 0x1e6   : > { %v2367_v34 = vpop.f32.mrb[3].mxu1 }
 0x1e7   : > { %v1591_v35 = vadd.f32 %v2365_v30, %v2343_v29 }
 0x202   : > { %v2385_v36 = vpop.f32.mrb[4].mxu0 }
 0x203   : > { %v2407_v37 = vpop.f32.mrb[4].mxu1  ;;  %v2386_v38 = vpop.f32.mrb[5].mxu0 }
 0x204   : > { %v2408_v39 = vpop.f32.mrb[5].mxu1  ;;  %v2387_v40 = vadd.f32 %v2386_v38, %v2385_v36  ;;  %v2388_v42 = vpop.f32.mrb[6].mxu0 }
 0x205   : > { %v2409_v41 = vadd.f32 %v2408_v39, %v2407_v37  ;;  %v2410_v43 = vpop.f32.mrb[6].mxu1  ;;  %v2389_v44 = vpop.f32.mrb[7].mxu0 }
 0x206   : > { %v2411_v45 = vpop.f32.mrb[7].mxu1  ;;  %v1631_v46 = vadd.f32 %v2387_v40, %v1591_v35 }
 0x208   : > { %v1671_v47 = vadd.f32 %v2409_v41, %v1631_v46 }
 0x222   : > { %v2429_v48 = vpop.f32.mrb[8].mxu0 }
 0x223   : > { %v2451_v49 = vpop.f32.mrb[8].mxu1  ;;  %v2430_v50 = vpop.f32.mrb[9].mxu0 }
 0x224   : > { %v2431_v51 = vadd.f32 %v2430_v50, %v2429_v48  ;;  %v2452_v52 = vpop.f32.mrb[9].mxu1  ;;  %v2432_v53 = vpop.f32.mrb[10].mxu0 }
 0x225   : > { %v2453_v54 = vadd.f32 %v2452_v52, %v2451_v49  ;;  %v2454_v55 = vpop.f32.mrb[10].mxu1  ;;  %v2433_v56 = vpop.f32.mrb[11].mxu0 }
 0x226   : > { %v1711_v57 = vadd.f32 %v2431_v51, %v1671_v47  ;;  %v2455_v58 = vpop.f32.mrb[11].mxu1 }
 0x228   : > { %v1751_v59 = vadd.f32 %v2453_v54, %v1711_v57 }
 0x242   : > { %v2473_v60 = vpop.f32.mrb[12].mxu0 }
 0x243   : > { %v2495_v61 = vpop.f32.mrb[12].mxu1  ;;  %v2474_v62 = vpop.f32.mrb[13].mxu0 }
 0x244   : > { %v2475_v63 = vadd.f32 %v2474_v62, %v2473_v60  ;;  %v2496_v0 = vpop.f32.mrb[13].mxu1  ;;  %v2476_v1 = vpop.f32.mrb[14].mxu0 }
 0x245   : > { %v2497_v2 = vadd.f32 %v2496_v0, %v2495_v61  ;;  %v2498_v3 = vpop.f32.mrb[14].mxu1  ;;  %v2477_v4 = vpop.f32.mrb[15].mxu0 }
 0x246   : > { %v1791_v5 = vadd.f32 %v2475_v63, %v1751_v59  ;;  %v2499_v6 = vpop.f32.mrb[15].mxu1  ;;  %1841 = sbr.rel (%p2309_p6) target bundleno = 815 (0x32f), region = 68 }
 0x248   : > { %v1831_v8 = vadd.f32 %v2497_v2, %v1791_v5 }
 0x24a   : > { %v1836_v9 = vadd.f32 %v1831_v8, %v427_v7 }
 0x24c   : > { %1837 = vst [vmem:[#allocation2] sm:$0xff] %v1836_v9 }
 0x253   : > { %v1842_v18 = vld [vmem:[#allocation2] sm:$0xff] }
 0x254   : > { %v1843_v19 = vmax.f32 %v1842_v18, 0.0 }
 0x256   : > { %v1861_v21 = vpack.c.bf16 %v1843_v19, %v1843_v19 }
 0x258   : > { %2527 = vmatmul.mubr.bf16.vlgmr.msra.gmra.mrb[0].mxu0 %v1861_v21 }
 0x32b   : > { %v1950_v23 = vpop.f32.mrb[0].mxu0 }
 0x32c   : > { %v1951_v24 = vadd.f32 %v2310_v22, %v1950_v23  ;;  %v2528_v25 = vpop.f32.mrb[1].mxu0 }
 0x32d   : > { %v1953_v26 = vpop.f32.mrb[2].mxu0 }
 0x32e   : > { %1956 = vst [vmem:[%s3595_s20] sm:$0xff] %v1951_v24  ;;  %v2529_v27 = vpop.f32.mrb[3].mxu0 }
 0x32f PF: > { %s3900_s26 = sld [smem:[#allocation22_spill]]  ;;  %s3901_s8 = sld [smem:[#allocation33_spill]] }
 0x330   : > { %s1972_s27 = sshll.u32 %s3595_s20, 4  ;;  %s1958_s1 = scalar_lea.sflag [#allocation5], %s3579_s28  ;;  %s1973_s27 = int_to_ptr.vmem [resolvable:$true] %s1972_s27 }
 0x331   : > { %s2983_s3 = scalar_lea.vmem %s1973_s27, 128  ;;  %p3902_p12 = scmp.ne.s32.totalorder %s3888_s24, 0 }
 0x332   : > { %p2984_p11 = scmp.ne.s32.totalorder %s1973_s27, %s2983_s3  ;;  %s3152_s4 = smov [#allocation12]  }
 0x333   : > { %s2987_s5 = sshll.u32 %s3152_s4, 4  ;;  %s2988_s5 = int_to_ptr.vmem [resolvable:$false] %s2987_s5 }
 0x334   : > { %p2985_p9 = pnand %p2984_p11, %p3902_p12  ;;  %s2989_s7 = scalar_lea.vmem %s2988_s5, 256 }
 0x335   : > { %s2320_s29 = sshll.u32 %s3900_s26, 7  ;;  %p2990_p3 = scmp.lt.s32.totalorder %s1973_s27, %s2988_s5 }
 0x336   : > { %s3750_s11 = scalar_lea.hbm %s3901_s8, %s2320_s29  ;;  %p2986_p1 = pneg %p2985_p9 }
 0x337   : > { %p2991_p10 = scmp.lt.s32.totalorder %s2989_s7, %s2983_s3 }
 0x339   : > { %p2992_p4 = por %p2991_p10, %p2990_p3 }
 0x33b   : > { %p2993_p8 = pnand %p2992_p4, %p2986_p1 }
 0x33d   : > { %2996 = shalt.err (!%p2993_p8)
}
 0x33e   : > { %s2997_s28 = scalar_lea.hbm %s3750_s11, 128  ;;  %s3001_s13 = scalar_lea.hbm %s3901_s8, 256 }
 0x33f   : > { %p2998_p5 = scmp.ne.s32.totalorder %s3750_s11, %s2997_s28  ;;  %p3002_p7 = scmp.lt.u32.totalorder %s3750_s11, %s3901_s8 }
 0x340   : > { %p3003_p0 = scmp.lt.u32.totalorder %s3001_s13, %s2997_s28  ;;  %p3005_p11 = scmp.lt.u32.totalorder %s2997_s28, %s3750_s11 }
 0x341   : > { %p2999_p2 = pnand %p2998_p5, %p3902_p12 }
 0x342   : > { %p3004_p6 = por %p3003_p0, %p3002_p7 }
 0x343   : > { %p3000_p13 = pneg %p2999_p2 }
 0x344   : > { %p3006_p9 = por %p3005_p11, %p3004_p6 }
 0x346   : > { %p3007_p1 = pnand %p3006_p9, %p3000_p13 }
 0x348   : > { %3010 = shalt.err (!%p3007_p1)
}
 0x349   : > { %2541 = dma.vmem_to_hbm [thread:$0]  (%p3902_p12), %s1973_s27, 128, %s3750_s11, %s1958_s1  }
 0x34a PF: > { %s3903_s20 = sld [smem:[#allocation28_spill]]  ;;  %p2564_p3 = scmp.ge.s32.totalorder %s3141_s6, 2 }
 0x34b   : > { %s1984_s12 = sand.u32 1, %s3089_s18  }
 0x34c   : > { %s1985_s23 = scalar_lea.sflag [#allocation5], %s1984_s12 }
 0x350   : > { %p3904_p10 = scmp.ne.s32.totalorder %s3903_s20, 0 }
 0x352   : > { %p2560_p4 = pnand %p2564_p3, %p3904_p10 }
 0x354   : > { %3084 = dma.done.wait (!%p2560_p4), %s1985_s23, 128  }
 0x355   : > { %3086 = vsyncadd (!%p2560_p4), %s1985_s23, 4294967168  ;;  %s27_s6 = sadd.s32 1, %s3141_s6   ;;  %s3906_s24 = sld [smem:[#allocation18_spill]] }
 0x356   : > { %p3776_p8 = scmp.ge.s32.totalorder %s27_s6, 8   ;;  %s3907_s20 = sld [smem:[#allocation27_spill]] }
 0x357   : > { %s3908_s29 = sld [smem:[#allocation19_spill]]  ;;  %s3909_s23 = sld [smem:[#allocation26_spill]] }
 0x358   : > { %s3910_s14 = sld [smem:[#allocation20_spill]]  ;;  %s3911_s9 = sld [smem:[#allocation29_spill]] }
 0x359   : > { %s3912_s27 = sld [smem:[#allocation23_spill]]  ;;  %s3913_s11 = sld [smem:[#allocation24_spill]] }
 0x35a   : > { %s3914_s1 = sld [smem:[#allocation25_spill]]  ;;  %s3916_s18 = smov %s3093_s19 }
 0x35b   : > { %s3917_s19 = smov %s3906_s24  ;;  %s3918_s21 = smov %s3105_s22 }
 0x35c   : > { %s3920_s24 = smov %s3117_s25  ;;  %s3923_s28 = smov %s3137_s30 }
 0x35d   : > { %s3919_s22 = smov %s3908_s29  ;;  %26 = sbr.rel (!%p3776_p8) target bundleno = 19 (0x13), region = 141 }
 0x35e   : > { %s3921_s25 = smov %s3910_s14  ;;  %s3922_s26 = smov %s3911_s9 }
 0x35f   : > { %s3924_s29 = smov %s3913_s11 }
 0x360   : > { %s3925_s30 = smov %s3914_s1 }
 0x364   :  { %1990 = vsyncpa [#allocation4], 1 }
 0x365   :  { %1992 = vsyncpa [#allocation4 + $0x1], 1 }
 0x366   :  { %1993 = vsyncpa [#allocation7], 1 }
 0x367   :  { %1995 = vsyncpa [#allocation7 + $0x1], 1 }
 0x368   :  { %1996 = vsyncpa [#allocation10], 1 }
 0x369   :  { %1998 = vsyncpa [#allocation10 + $0x1], 1 }
 0x36a   :  { %1999 = vsyncpa [#allocation5], 1 }
 0x36b   :  { %2001 = vsyncpa [#allocation5 + $0x1], 1 }

</bundles_post_ra>
